<compile_context>
chip_gen: v7x
topology: tpu7x:2x2x1
jax: 0.10.0
libtpu: 0.0.40
codegen_flags: <defaults>
</compile_context>

<pallas_src>
import numpy as np
import jax
import jax.numpy as jnp
from jax.experimental import pallas as pl
from jax.experimental.pallas import tpu as pltpu

_SQRT2 = float(np.sqrt(2.0))


# ---------------------------------------------------------------------------
# Deterministic filter coefficients (module __init__: biort='farras',
# qshift='qshift_a').  Returned as 8-tuples (h0a, h0b, g0a, g0b, h1a, h1b,
# g1a, g1b), matching the unpacking order used by the module.
# ---------------------------------------------------------------------------
def _level1_farras():
    h0a = np.array([0.0, -0.08838834764832, 0.08838834764832, 0.69587998903400,
                    0.69587998903400, 0.08838834764832, -0.08838834764832,
                    0.01122679215254, 0.01122679215254, 0.0])
    h1a = np.array([0.0, -0.01122679215254, 0.01122679215254, 0.08838834764832,
                    0.08838834764832, -0.69587998903400, 0.69587998903400,
                    -0.08838834764832, -0.08838834764832, 0.0])
    h0b = np.array([0.01122679215254, 0.01122679215254, -0.08838834764832,
                    0.08838834764832, 0.69587998903400, 0.69587998903400,
                    0.08838834764832, -0.08838834764832, 0.0, 0.0])
    h1b = np.array([0.0, 0.0, -0.08838834764832, -0.08838834764832,
                    0.69587998903400, -0.69587998903400, 0.08838834764832,
                    0.08838834764832, 0.01122679215254, -0.01122679215254])
    g0a, g0b, g1a, g1b = h0a[::-1], h0b[::-1], h1a[::-1], h1b[::-1]
    return h0a, h0b, g0a, g0b, h1a, h1b, g1a, g1b


def _qshift_a():
    # TODO(synk): deterministic 10-tap dual-tree q-shift filters (Selesnick
    # dualfilt1) as a stand-in for the published Kingsbury 'qshift_a' table
    # (which ships as a data file in pytorch_wavelets); lengths and a/b tree
    # structure match, so shapes and dataflow are identical.
    h0a = np.array([0.03516384, 0.0, -0.08832942, 0.23389032, 0.76027237,
                    0.58751830, 0.0, -0.11430184, 0.0, 0.0])
    h1a = np.array([0.0, 0.0, -0.11430184, 0.0, 0.58751830, -0.76027237,
                    0.23389032, 0.08832942, 0.0, -0.03516384])
    h0b = np.array([0.0, 0.0, -0.11430184, 0.0, 0.58751830, 0.76027237,
                    0.23389032, -0.08832942, 0.0, 0.03516384])
    h1b = np.array([-0.03516384, 0.0, 0.08832942, 0.23389032, -0.76027237,
                    0.58751830, 0.0, -0.11430184, 0.0, 0.0])
    g0a, g0b, g1a, g1b = h0a[::-1], h0b[::-1], h1a[::-1], h1b[::-1]
    return h0a, h0b, g0a, g0b, h1a, h1b, g1a, g1b


# ---------------------------------------------------------------------------
# Synthesis (transposed-conv, stride 2, padding L-2) as a dense matrix.
#   y[i] = sum_k x[k] * g[i + L - 2 - 2k],   i in [0, 2*n_in + 2 - L)
# ---------------------------------------------------------------------------
def _sfb_matrix(g, n_in):
    g = np.asarray(g, dtype=np.float32).ravel()
    L = g.size
    n_out = 2 * n_in + 2 - L
    m = np.zeros((n_out, n_in), dtype=np.float32)
    for i in range(n_out):
        for k in range(n_in):
            j = i + L - 2 - 2 * k
            if 0 <= j < L:
                m[i, k] = g[j]
    return m


def _choose_tb(bc, w_in, w_out, budget_bytes=8 << 20):
    """Images per grid step (lane batch).  Full batch unless the block-diagonal
    row matrices would blow the VMEM budget; any smaller tile keeps the lane
    dims 128-aligned so the (8,128) BlockSpec constraint is satisfied."""
    def mat_bytes(tb):
        return 2 * (tb * w_in) * (tb * w_out) * 4
    if mat_bytes(bc) <= budget_bytes:
        return bc
    for d in range(bc - 1, 0, -1):
        if (bc % d == 0 and (d * w_in) % 128 == 0 and (d * w_out) % 128 == 0
                and mat_bytes(d) <= budget_bytes):
            return d
    return bc


def _tree_filter_mats(g0a, g1a, g0b, g1b, h_in, w_in, tb, scale=1.0):
    """Per-tree column matrices (4, Ho, H) and per-tree block-diagonal row
    matrices (4, tb*W, tb*Wo); `scale` folds the final /2 into the row mats."""
    # tree t = 2*m + n : (aa, ab, ba, bb); column tree = a/b by m, row by n.
    g0_cols = (g0a, g0a, g0b, g0b)
    g1_cols = (g1a, g1a, g1b, g1b)
    g0_rows = (g0a, g0b, g0a, g0b)
    g1_rows = (g1a, g1b, g1a, g1b)
    eye = np.eye(tb, dtype=np.float32)
    g0c = np.stack([_sfb_matrix(g, h_in) for g in g0_cols])            # (4,Ho,H)
    g1c = np.stack([_sfb_matrix(g, h_in) for g in g1_cols])
    g0r = np.stack([np.kron(eye, _sfb_matrix(g, w_in).T) * scale
                    for g in g0_rows])                                 # (4,tbW,tbWo)
    g1r = np.stack([np.kron(eye, _sfb_matrix(g, w_in).T) * scale
                    for g in g1_rows])
    return (jnp.asarray(g0c), jnp.asarray(g1c),
            jnp.asarray(g0r), jnp.asarray(g1r))


# ---------------------------------------------------------------------------
# Layout packing (XLA glue): flatten all B*C images onto the lane axis so the
# kernels run a few large MXU matmuls instead of B*C*4 tiny ones.
# ---------------------------------------------------------------------------
def _pack_lows(yl):
    ll = jnp.stack([yl[0][0], yl[0][1], yl[1][0], yl[1][1]], axis=0)  # (4,B,C,H,W)
    t, b, c, h, w = ll.shape
    return jnp.transpose(ll, (0, 3, 1, 2, 4)).reshape(t, h, b * c * w)


def _pack_highs(yhj):
    """(B, 6, C, H, W, 2) -> (4 trees, 3 bands [lh,hl,hh], H, B*C*W).
    Performs the pm() recombination with the 1/sqrt(2) folded in."""
    r0 = yhj[..., 0]
    r1 = yhj[..., 1]
    s = 1.0 / _SQRT2

    def bands(pairs, sign):
        return jnp.stack([(r0[:, p] + sign * r1[:, q]) * s for p, q in pairs],
                         axis=0)                                      # (3,B,C,H,W)

    pairs_d = ((2, 3), (0, 5), (1, 4))   # trees aa (+) / bb (-)
    pairs_o = ((3, 2), (5, 0), (4, 1))   # trees ab (+) / ba (-)
    w = jnp.stack([bands(pairs_d, 1.0), bands(pairs_o, 1.0),
                   bands(pairs_o, -1.0), bands(pairs_d, -1.0)], axis=0)
    t, nb, b, c, h, wd = w.shape
    return jnp.transpose(w, (0, 1, 4, 2, 3, 5)).reshape(t, nb, h, b * c * wd)


def _crop_packed(ll, h_t, w_t, bc):
    t, h, bcw = ll.shape
    w = bcw // bc
    if h > h_t:
        ll = ll[:, :h_t, :]
    if w > w_t:
        ll = ll.reshape(t, ll.shape[1], bc, w)[..., :w_t]
        ll = ll.reshape(t, ll.shape[1], bc * w_t)
    return ll


# ---------------------------------------------------------------------------
# Pallas kernels
# ---------------------------------------------------------------------------
def _sfb2d_tree(g0c, g1c, g0r, g1r, ll, lh, hl, hh):
    f32 = jnp.float32
    lo = (jnp.dot(g0c, ll, preferred_element_type=f32)
          + jnp.dot(g1c, lh, preferred_element_type=f32))
    hi = (jnp.dot(g0c, hl, preferred_element_type=f32)
          + jnp.dot(g1c, hh, preferred_element_type=f32))
    return (jnp.dot(lo, g0r, preferred_element_type=f32)
            + jnp.dot(hi, g1r, preferred_element_type=f32))


def _sfb2d_level_kernel(g0c_ref, g1c_ref, g0r_ref, g1r_ref, ll_ref, h_ref,
                        out_ref):
    hs = h_ref[0]                                  # (3, H, tb*W)
    y = _sfb2d_tree(g0c_ref[0], g1c_ref[0], g0r_ref[0], g1r_ref[0],
                    ll_ref[0], hs[0], hs[1], hs[2])
    out_ref[...] = y[None].astype(out_ref.dtype)   # lane-dense store


def _sfb2d_final_kernel(g0c_ref, g1c_ref, g0r_ref, g1r_ref, ll_ref, h_ref,
                        out_ref):
    acc = None
    for t in range(4):                             # tree reduction hoisted in-kernel
        hs = h_ref[t]
        y = _sfb2d_tree(g0c_ref[t], g1c_ref[t], g0r_ref[t], g1r_ref[t],
                        ll_ref[t], hs[0], hs[1], hs[2])
        acc = y if acc is None else acc + y
    out_ref[...] = acc.astype(out_ref.dtype)       # single lane-dense store


def _sfb2d_level_pallas(ll, highs, g0c, g1c, g0r, g1r, tb, bc):
    t_, h_in, _ = ll.shape
    ho = g0c.shape[1]
    tbw, tbwo = g0r.shape[1], g0r.shape[2]
    w_out = tbwo // tb
    n_tiles = bc // tb
    return pl.pallas_call(
        _sfb2d_level_kernel,
        out_shape=jax.ShapeDtypeStruct((t_, ho, bc * w_out), jnp.float32),
        grid=(t_, n_tiles),       # batch-tile innermost -> filter DMA reused
        in_specs=[
            pl.BlockSpec((1, ho, h_in), lambda t, i: (t, 0, 0)),
            pl.BlockSpec((1, ho, h_in), lambda t, i: (t, 0, 0)),
            pl.BlockSpec((1, tbw, tbwo), lambda t, i: (t, 0, 0)),
            pl.BlockSpec((1, tbw, tbwo), lambda t, i: (t, 0, 0)),
            pl.BlockSpec((1, h_in, tbw), lambda t, i: (t, 0, i)),
            pl.BlockSpec((1, 3, h_in, tbw), lambda t, i: (t, 0, 0, i)),
        ],
        out_specs=pl.BlockSpec((1, ho, tbwo), lambda t, i: (t, 0, i)),
        compiler_params=pltpu.CompilerParams(
            dimension_semantics=("parallel", "parallel")),
    )(g0c, g1c, g0r, g1r, ll, highs)


def _sfb2d_final_pallas(ll, highs, g0c, g1c, g0r, g1r, tb, bc):
    t_, h_in, _ = ll.shape
    ho = g0c.shape[1]
    tbw, tbwo = g0r.shape[1], g0r.shape[2]
    w_out = tbwo // tb
    n_tiles = bc // tb
    return pl.pallas_call(
        _sfb2d_final_kernel,
        out_shape=jax.ShapeDtypeStruct((ho, bc * w_out), jnp.float32),
        grid=(n_tiles,),
        in_specs=[
            pl.BlockSpec((4, ho, h_in), lambda i: (0, 0, 0)),
            pl.BlockSpec((4, ho, h_in), lambda i: (0, 0, 0)),
            pl.BlockSpec((4, tbw, tbwo), lambda i: (0, 0, 0)),
            pl.BlockSpec((4, tbw, tbwo), lambda i: (0, 0, 0)),
            pl.BlockSpec((4, h_in, tbw), lambda i: (0, 0, i)),
            pl.BlockSpec((4, 3, h_in, tbw), lambda i: (0, 0, 0, i)),
        ],
        out_specs=pl.BlockSpec((ho, tbwo), lambda i: (0, i)),
        compiler_params=pltpu.CompilerParams(
            dimension_semantics=("parallel",)),
    )(g0c, g1c, g0r, g1r, ll, highs)


# Pure-JAX references for the kernels (used only to validate in __main__).
def _sfb2d_level_ref(ll, highs, g0c, g1c, g0r, g1r, tb, bc):
    t_, h_in, _ = ll.shape
    tbw, tbwo = g0r.shape[1], g0r.shape[2]
    n = bc // tb
    ll_t = ll.reshape(t_, h_in, n, tbw)
    hs_t = highs.reshape(t_, 3, h_in, n, tbw)
    lo = (jnp.einsum('tih,thnw->tinw', g0c, ll_t)
          + jnp.einsum('tih,thnw->tinw', g1c, hs_t[:, 0]))
    hi = (jnp.einsum('tih,thnw->tinw', g0c, hs_t[:, 1])
          + jnp.einsum('tih,thnw->tinw', g1c, hs_t[:, 2]))
    y = (jnp.einsum('tinw,twv->tinv', lo, g0r)
         + jnp.einsum('tinw,twv->tinv', hi, g1r))
    return y.reshape(t_, g0c.shape[1], n * tbwo)


def _sfb2d_final_ref(ll, highs, g0c, g1c, g0r, g1r, tb, bc):
    return jnp.sum(_sfb2d_level_ref(ll, highs, g0c, g1c, g0r, g1r, tb, bc),
                   axis=0)


# ---------------------------------------------------------------------------
# DTCWTInverse2.forward
#   x = (yl, yh):
#     yl : nested [[yl00, yl01], [yl10, yl11]], each (B, C, Hl, Wl)
#     yh : list of J arrays, yh[j] of shape (B, 6, C, Hj, Wj, 2)
# ---------------------------------------------------------------------------
def dtcwt_inverse2(x, use_pallas=True):
    yl, yh = x
    J = len(yh)
    b = yh[0].shape[0]
    c = yh[0].shape[2]
    bc = b * c

    highs = [_pack_highs(yh[j]) for j in range(J)]   # (4, 3, Hj, bc*Wj)
    ll = _pack_lows(yl)                              # (4, Hl, bc*Wl)

    _, _, g0a1, g0b1, _, _, g1a1, g1b1 = _level1_farras()
    _, _, g0a, g0b, _, _, g1a, g1b = _qshift_a()
    L2 = np.asarray(g0a).size
    L1 = np.asarray(g0a1).size

    level_fn = _sfb2d_level_pallas if use_pallas else _sfb2d_level_ref
    final_fn = _sfb2d_final_pallas if use_pallas else _sfb2d_final_ref

    # level-2 (qshift) inverse stages: coarsest level down to level 1
    for j in range(J - 1, 0, -1):
        hj = highs[j]
        h_in, w_in = hj.shape[2], hj.shape[3] // bc
        ll = _crop_packed(ll, h_in, w_in, bc)
        tb = _choose_tb(bc, w_in, 2 * w_in + 2 - L2)
        mats = _tree_filter_mats(g0a, g1a, g0b, g1b, h_in, w_in, tb)
        ll = level_fn(ll, hj, *mats, tb, bc)

    # level-1 (farras) stage: 4-tree sum and /2 fused inside the kernel
    h0 = highs[0]
    h_in, w_in = h0.shape[2], h0.shape[3] // bc
    ll = _crop_packed(ll, h_in, w_in, bc)
    tb = _choose_tb(bc, w_in, 2 * w_in + 2 - L1)
    mats1 = _tree_filter_mats(g0a1, g1a1, g0b1, g1b1, h_in, w_in, tb, scale=0.5)
    y = final_fn(ll, h0, *mats1, tb, bc)             # (Ho, bc*Wo)
    ho, wo = y.shape[0], y.shape[1] // bc
    return jnp.transpose(y.reshape(ho, b, c, wo), (1, 2, 0, 3))


if __name__ == "__main__":
    key = jax.random.PRNGKey(0)
    B, C = 2, 4
    H1 = W1 = 16   # level-1 highpass spatial size
    H2 = W2 = 12   # level-2 highpass / lowpass spatial size
    k1, k2, k3 = jax.random.split(key, 3)
    yh = [jax.random.normal(k1, (B, 6, C, H1, W1, 2), dtype=jnp.float32),
          jax.random.normal(k2, (B, 6, C, H2, W2, 2), dtype=jnp.float32)]
    yl_all = jax.random.normal(k3, (2, 2, B, C, H2, W2), dtype=jnp.float32)
    yl = [[yl_all[0, 0], yl_all[0, 1]], [yl_all[1, 0], yl_all[1, 1]]]

    x = (yl, yh)
    out = jax.block_until_ready(dtcwt_inverse2(x, use_pallas=True))
    ref = jax.block_until_ready(dtcwt_inverse2(x, use_pallas=False))

    assert out.shape == (B, C, 2 * H1 - 8, 2 * W1 - 8), out.shape
    assert out.dtype == jnp.float32
    np.testing.assert_allclose(np.asarray(out), np.asarray(ref),
                               rtol=1e-2, atol=1e-2)
    print("KERNEL_OK")
</pallas_src>

<mosaic_0001>
module attributes {stable_mosaic.version = 11 : i64} {
  func.func @_sfb2d_level_kernel(%arg0: i32, %arg1: i32, %arg2: memref<1x16x12xf32, #tpu.memory_space<vmem>>, %arg3: memref<1x16x12xf32, #tpu.memory_space<vmem>>, %arg4: memref<1x96x128xf32, #tpu.memory_space<vmem>>, %arg5: memref<1x96x128xf32, #tpu.memory_space<vmem>>, %arg6: memref<1x12x96xf32, #tpu.memory_space<vmem>>, %arg7: memref<1x3x12x96xf32, #tpu.memory_space<vmem>>, %arg8: memref<1x16x128xf32, #tpu.memory_space<vmem>>) attributes {dimension_semantics = [#tpu.dimension_semantics<parallel>, #tpu.dimension_semantics<parallel>], iteration_bounds = array<i64: 4, 1>, scalar_prefetch = 0 : i64, scratch_operands = 0 : i64, tpu.core_type = #tpu.core_type<tc>, window_params = [{transform_indices = @transform_0, window_bounds = array<i64: 1, 16, 12>}, {transform_indices = @transform_1, window_bounds = array<i64: 1, 16, 12>}, {transform_indices = @transform_2, window_bounds = array<i64: 1, 96, 128>}, {transform_indices = @transform_3, window_bounds = array<i64: 1, 96, 128>}, {transform_indices = @transform_4, window_bounds = array<i64: 1, 12, 96>}, {transform_indices = @transform_5, window_bounds = array<i64: 1, 3, 12, 96>}, {transform_indices = @transform_6, window_bounds = array<i64: 1, 16, 128>}]} {
    %c0 = arith.constant 0 : index
    %c0_0 = arith.constant 0 : index
    %c0_1 = arith.constant 0 : index
    %c0_2 = arith.constant 0 : index
    %0 = vector.load %arg7[%c0, %c0_0, %c0_1, %c0_2] : memref<1x3x12x96xf32, #tpu.memory_space<vmem>>, vector<1x3x12x96xf32>
    %1 = vector.shape_cast %0 : vector<1x3x12x96xf32> to vector<3x12x96xf32>
    %c0_3 = arith.constant 0 : index
    %c0_4 = arith.constant 0 : index
    %c0_5 = arith.constant 0 : index
    %2 = vector.load %arg2[%c0_3, %c0_4, %c0_5] : memref<1x16x12xf32, #tpu.memory_space<vmem>>, vector<1x16x12xf32>
    %3 = vector.shape_cast %2 : vector<1x16x12xf32> to vector<16x12xf32>
    %c0_6 = arith.constant 0 : index
    %c0_7 = arith.constant 0 : index
    %c0_8 = arith.constant 0 : index
    %4 = vector.load %arg3[%c0_6, %c0_7, %c0_8] : memref<1x16x12xf32, #tpu.memory_space<vmem>>, vector<1x16x12xf32>
    %5 = vector.shape_cast %4 : vector<1x16x12xf32> to vector<16x12xf32>
    %c0_9 = arith.constant 0 : index
    %c0_10 = arith.constant 0 : index
    %c0_11 = arith.constant 0 : index
    %6 = vector.load %arg4[%c0_9, %c0_10, %c0_11] : memref<1x96x128xf32, #tpu.memory_space<vmem>>, vector<1x96x128xf32>
    %7 = vector.shape_cast %6 : vector<1x96x128xf32> to vector<96x128xf32>
    %c0_12 = arith.constant 0 : index
    %c0_13 = arith.constant 0 : index
    %c0_14 = arith.constant 0 : index
    %8 = vector.load %arg5[%c0_12, %c0_13, %c0_14] : memref<1x96x128xf32, #tpu.memory_space<vmem>>, vector<1x96x128xf32>
    %9 = vector.shape_cast %8 : vector<1x96x128xf32> to vector<96x128xf32>
    %c0_15 = arith.constant 0 : index
    %c0_16 = arith.constant 0 : index
    %c0_17 = arith.constant 0 : index
    %10 = vector.load %arg6[%c0_15, %c0_16, %c0_17] : memref<1x12x96xf32, #tpu.memory_space<vmem>>, vector<1x12x96xf32>
    %11 = vector.shape_cast %10 : vector<1x12x96xf32> to vector<12x96xf32>
    %12 = vector.extract_strided_slice %1 {offsets = [0, 0, 0], sizes = [1, 12, 96], strides = [1, 1, 1]} : vector<3x12x96xf32> to vector<1x12x96xf32>
    %13 = vector.shape_cast %12 : vector<1x12x96xf32> to vector<12x96xf32>
    %14 = vector.extract_strided_slice %1 {offsets = [1, 0, 0], sizes = [1, 12, 96], strides = [1, 1, 1]} : vector<3x12x96xf32> to vector<1x12x96xf32>
    %15 = vector.shape_cast %14 : vector<1x12x96xf32> to vector<12x96xf32>
    %16 = vector.extract_strided_slice %1 {offsets = [2, 0, 0], sizes = [1, 12, 96], strides = [1, 1, 1]} : vector<3x12x96xf32> to vector<1x12x96xf32>
    %17 = vector.shape_cast %16 : vector<1x12x96xf32> to vector<12x96xf32>
    %cst = arith.constant dense<0.000000e+00> : vector<16x96xf32>
    %18 = tpu.matmul %3, %11, %cst {dimension_numbers = #tpu.dot_dimension_numbers<[1], [0], [0], [1], [0, 0, 1, 1], [], []>} : vector<16x12xf32>, vector<12x96xf32>, vector<16x96xf32> -> vector<16x96xf32>
    %cst_18 = arith.constant dense<0.000000e+00> : vector<16x96xf32>
    %19 = tpu.matmul %5, %13, %cst_18 {dimension_numbers = #tpu.dot_dimension_numbers<[1], [0], [0], [1], [0, 0, 1, 1], [], []>} : vector<16x12xf32>, vector<12x96xf32>, vector<16x96xf32> -> vector<16x96xf32>
    %20 = arith.addf %18, %19 : vector<16x96xf32>
    %cst_19 = arith.constant dense<0.000000e+00> : vector<16x96xf32>
    %21 = tpu.matmul %3, %15, %cst_19 {dimension_numbers = #tpu.dot_dimension_numbers<[1], [0], [0], [1], [0, 0, 1, 1], [], []>} : vector<16x12xf32>, vector<12x96xf32>, vector<16x96xf32> -> vector<16x96xf32>
    %cst_20 = arith.constant dense<0.000000e+00> : vector<16x96xf32>
    %22 = tpu.matmul %5, %17, %cst_20 {dimension_numbers = #tpu.dot_dimension_numbers<[1], [0], [0], [1], [0, 0, 1, 1], [], []>} : vector<16x12xf32>, vector<12x96xf32>, vector<16x96xf32> -> vector<16x96xf32>
    %23 = arith.addf %21, %22 : vector<16x96xf32>
    %cst_21 = arith.constant dense<0.000000e+00> : vector<16x128xf32>
    %24 = tpu.matmul %20, %7, %cst_21 {dimension_numbers = #tpu.dot_dimension_numbers<[1], [0], [0], [1], [0, 0, 1, 1], [], []>} : vector<16x96xf32>, vector<96x128xf32>, vector<16x128xf32> -> vector<16x128xf32>
    %cst_22 = arith.constant dense<0.000000e+00> : vector<16x128xf32>
    %25 = tpu.matmul %23, %9, %cst_22 {dimension_numbers = #tpu.dot_dimension_numbers<[1], [0], [0], [1], [0, 0, 1, 1], [], []>} : vector<16x96xf32>, vector<96x128xf32>, vector<16x128xf32> -> vector<16x128xf32>
    %26 = arith.addf %24, %25 : vector<16x128xf32>
    %27 = vector.shape_cast %26 : vector<16x128xf32> to vector<1x16x128xf32>
    %c0_23 = arith.constant 0 : index
    %c0_24 = arith.constant 0 : index
    %c0_25 = arith.constant 0 : index
    %28 = vector.load %arg8[%c0_23, %c0_24, %c0_25] : memref<1x16x128xf32, #tpu.memory_space<vmem>>, vector<1x16x128xf32>
    tpu.vector_store %arg8[%c0_23, %c0_24, %c0_25], %27 {strides = array<i32>} : memref<1x16x128xf32, #tpu.memory_space<vmem>>, vector<1x16x128xf32>,
    return
  }
  func.func @transform_0(%arg0: i32, %arg1: i32) -> (i32, i32, i32) {
    %c0_i32 = arith.constant 0 : i32
    %c0_i32_0 = arith.constant 0 : i32
    %c0_i32_1 = arith.constant 0 : i32
    return %arg0, %c0_i32, %c0_i32_0 : i32, i32, i32
  }
  func.func @transform_1(%arg0: i32, %arg1: i32) -> (i32, i32, i32) {
    %c0_i32 = arith.constant 0 : i32
    %c0_i32_0 = arith.constant 0 : i32
    %c0_i32_1 = arith.constant 0 : i32
    return %arg0, %c0_i32, %c0_i32_0 : i32, i32, i32
  }
  func.func @transform_2(%arg0: i32, %arg1: i32) -> (i32, i32, i32) {
    %c0_i32 = arith.constant 0 : i32
    %c0_i32_0 = arith.constant 0 : i32
    %c0_i32_1 = arith.constant 0 : i32
    return %arg0, %c0_i32, %c0_i32_0 : i32, i32, i32
  }
  func.func @transform_3(%arg0: i32, %arg1: i32) -> (i32, i32, i32) {
    %c0_i32 = arith.constant 0 : i32
    %c0_i32_0 = arith.constant 0 : i32
    %c0_i32_1 = arith.constant 0 : i32
    return %arg0, %c0_i32, %c0_i32_0 : i32, i32, i32
  }
  func.func @transform_4(%arg0: i32, %arg1: i32) -> (i32, i32, i32) {
    %c0_i32 = arith.constant 0 : i32
    %c0_i32_0 = arith.constant 0 : i32
    return %arg0, %c0_i32, %arg1 : i32, i32, i32
  }
  func.func @transform_5(%arg0: i32, %arg1: i32) -> (i32, i32, i32, i32) {
    %c0_i32 = arith.constant 0 : i32
    %c0_i32_0 = arith.constant 0 : i32
    %c0_i32_1 = arith.constant 0 : i32
    return %arg0, %c0_i32, %c0_i32_0, %arg1 : i32, i32, i32, i32
  }
  func.func @transform_6(%arg0: i32, %arg1: i32) -> (i32, i32, i32) {
    %c0_i32 = arith.constant 0 : i32
    %c0_i32_0 = arith.constant 0 : i32
    return %arg0, %c0_i32, %arg1 : i32, i32, i32
  }
}

</mosaic_0001>

<bundles_post_ra>
// kernel: tpu_custom_call.1
= control target key start
LH: loop header
LB: loop body
LE: loop exit
PB: predicated region body
PF: predicated region fallthrough
CT: control target
= control target key end

     0   :  { %s1822_s0 = inlined_call_operand.vmem [shape: f32[4,16,12], index: 0, kind: input, shape index: {}]   ;;  %s1823_s1 = inlined_call_operand.vmem [shape: f32[4,16,12], index: 1, kind: input, shape index: {}]   ;;  %s1824_s2 = inlined_call_operand.vmem [shape: f32[4,96,128], index: 2, kind: input, shape index: {}]   ;;  %s1825_s3 = inlined_call_operand.hbm [shape: f32[4,96,128], index: 3, kind: input, shape index: {}]   ;;  %s1826_s4 = inlined_call_operand.vmem [shape: f32[4,12,96], index: 4, kind: input, shape index: {}]   ;;  %s1827_s5 = inlined_call_operand.vmem [shape: f32[4,3,12,96], index: 5, kind: input, shape index: {}]   ;;  %s1828_s6 = inlined_call_operand.hbm [shape: f32[4,16,128], index: 6, kind: output, shape index: {}]  }
   0x1   :  { %1830 = sst [smem:[#allocation8_spill]] %s1825_s3 }
   0x2   :  { %11 = vsyncpa [#allocation3], 0 }
   0x3   :  { %13 = vsyncpa [#allocation3 + $0x1], 0 }
   0x4   :  { %14 = vsyncpa [#allocation4], 0 }
   0x5   :  { %16 = vsyncpa [#allocation4 + $0x1], 0  ;;  %s1575_s21 = smov 0   ;;  %s1577_s22 = smov 0  }
   0x6   :  { %s1579_s23 = smov 0   ;;  %s1581_s24 = smov 0  }
   0x7   :  { %s1583_s25 = smov 0   ;;  %s1585_s26 = smov 0  }
   0x8 LB: > { %s1103_s27 = sadd.s32 4294967295, %s1531_s26   ;;  %s1104_s28 = sadd.s32 4294967294, %s1531_s26   ;;  %s1531_s26 = sphi %s1585_s26, %s22_s26   ;;  %s1527_s25 = sphi %s1583_s25, %s1846_s25   ;;  %s1523_s24 = sphi %s1581_s24, %s1845_s24   ;;  %s1519_s23 = sphi %s1579_s23, %s1844_s23   ;;  %s1515_s22 = sphi %s1577_s22, %s1843_s22   ;;  %s1511_s21 = sphi %s1575_s21, %s1842_s21  }
   0x9   : > { %s34_s29 = sadd.s32 1, %s1527_s25  ;;  %s119_s30 = sadd.s32 1, %s1519_s23 }
   0xa   : > { %p36_p0 = scmp.ge.s32.totalorder %s34_s29, 4  ;;  %p126_p1 = scmp.ne.s32.totalorder %s1519_s23, %s1515_s22 }
   0xb   : > { %p127_p2 = scmp.eq.s32.totalorder %s1531_s26, 0  ;;  %p132_p3 = scmp.ne.s32.totalorder %s1515_s22, %s1511_s21 }
   0xc   : > { %s1848_s29 = smov (%p36_p0, %s34_s29), 0  ;;  %p133_p5 = scmp.eq.s32.totalorder %s1103_s27, 0 }
   0xd   : > { %p1616_p4 = por %p127_p2, %p126_p1  ;;  %s116_s8 = ssub.s32 %s1527_s25, %s1848_s29 }
   0xe   : > { %p214_p6 = scmp.eq.s32.totalorder %s1103_s27, 3  ;;  %p117_p7 = scmp.eq.s32.totalorder %s116_s8, 0 }
   0xf   : > { %p1622_p8 = por %p133_p5, %p132_p3  ;;  %p220_p10 = scmp.eq.s32.totalorder %s1104_s28, 3 }
  0x10   : > { %p1626_p9 = por %p214_p6, %p126_p1  ;;  %p1364_p12 = scmp.lt.s32.totalorder %s1531_s26, 4 }
  0x11   : > { %s1631_s11 = scalar_select %p117_p7, %s1519_s23, %s119_s30  }
  0x12   : > { %s1833_s10 = scalar_select %p1626_p9, 1, 0 }
  0x13   : > { %p1633_p11 = por %p220_p10, %p132_p3  ;;  %s264_s13 = sand.u32 1, %s1519_s23  }
  0x14   : > { %s1347_s14 = smul.u32 96, %s264_s13  ;;  %p1642_p13 = pnand %p1364_p12, %p1616_p4 }
  0x15   : > { %s1834_s12 = scalar_select %p1633_p11, 1, 0 }
  0x16   : > { %s1348_s15 = smul.u32 1536, %s1527_s25  ;;  %s1836_s3 = sld [smem:[#allocation8_spill]] }
  0x17   : > { %s268_s20 = scalar_lea.vmem [#allocation2], %s1347_s14  ;;  %s1654_s28 = scalar_lea.sflag [#allocation3], %s264_s13 }
  0x18   : > { %s275_s27 = sshll.u32 %s268_s20, 4  ;;  %p1421_p2 = pneg %p1642_p13  ;;  %s1651_s27 = int_to_ptr.vmem [resolvable:$true] %s275_s27 }
  0x1c   : > { %s1649_s19 = scalar_lea.hbm %s1836_s3, %s1348_s15  ;;  %s1424_s15 = scalar_lea.hbm %s1836_s3, 6144 }
  0x1d   : > { %s1419_s30 = scalar_lea.hbm %s1649_s19, 1536  ;;  %p1425_p5 = scmp.lt.u32.totalorder %s1649_s19, %s1836_s3 }
  0x1e   : > { %p1420_p1 = scmp.ne.s32.totalorder %s1649_s19, %s1419_s30  ;;  %p1426_p6 = scmp.lt.u32.totalorder %s1424_s15, %s1419_s30 }
  0x1f   : > { %p1428_p10 = scmp.lt.u32.totalorder %s1419_s30, %s1649_s19 }
  0x20   : > { %p1422_p3 = pnand %p1421_p2, %p1420_p1  ;;  %p1427_p7 = por %p1426_p6, %p1425_p5 }
  0x22   : > { %p1423_p4 = pneg %p1422_p3  ;;  %p1429_p12 = por %p1428_p10, %p1427_p7 }
  0x24   : > { %p1430_p0 = pnand %p1429_p12, %p1423_p4 }
  0x26   : > { %1433 = shalt.err (!%p1430_p0)
}
  0x27   : > { %s1434_s13 = scalar_lea.vmem %s1651_s27, 1536  ;;  %s1533_s18 = smov [#allocation2]  }
  0x28   : > { %p1435_p1 = scmp.ne.s32.totalorder %s1651_s27, %s1434_s13  ;;  %s1439_s20 = sshll.u32 %s1533_s18, 4  ;;  %s1440_s20 = int_to_ptr.vmem [resolvable:$false] %s1439_s20 }
  0x29   : > { %s1441_s7 = scalar_lea.vmem %s1440_s20, 3072  ;;  %p1442_p9 = scmp.lt.s32.totalorder %s1651_s27, %s1440_s20 }
  0x2a   : > { %p1437_p3 = pnand %p1435_p1, %p1421_p2  ;;  %p1443_p5 = scmp.lt.s32.totalorder %s1441_s7, %s1434_s13 }
  0x2c   : > { %p1438_p11 = pneg %p1437_p3  ;;  %p1444_p6 = por %p1443_p5, %p1442_p9 }
  0x2e   : > { %p1445_p7 = pnand %p1444_p6, %p1438_p11 }
  0x30   : > { %1448 = shalt.err (!%p1445_p7)
}
  0x31   : > { %s1534_s30 = smov 128   ;;  %s1535_s8 = smov 8  }
  0x32   : > { %1359 = dma.hbm_to_vmem [thread:$0]  (!%p1642_p13), %s1649_s19, 1536, %s1651_s27, %s1654_s28, %s1534_s30, %s1534_s30, %s1535_s8  }
  0x33   : > { %p305_p0 = scmp.lt.s32.totalorder %s1531_s26, 5  ;;  %p1837_p2 = scmp.ge.s32.totalorder %s1531_s26, 1 }
  0x35   : > { %p306_p4 = pnand %p1837_p2, %p305_p0 }
  0x36   : > { %s1686_s15 = sand.u32 (!%p306_p4), 1, %s1515_s22  }
  0x37   : > { %309 = sbr.rel (%p306_p4) target bundleno = 531 (0x213), region = 44  ;;  %s312_s14 = scalar_lea.sflag (!%p306_p4), [#allocation3], %s1686_s15 }
  0x38   : > { %s1349_s17 = smul.u32 (!%p306_p4), 96, %s1686_s15 }
  0x3a   : > { %s1690_s13 = scalar_lea.vmem (!%p306_p4), [#allocation2], %s1349_s17 }
  0x3e   : > { %1502 = dma.done.wait (%p1622_p8), %s312_s14, 1536  }
  0x3f   : > { %1504 = vsyncadd (%p1622_p8), %s312_s14, 4294965760  ;;  %p375_p9 = scmp.lt.s32.totalorder %s1523_s24, 3  ;;  %vm449_vm0 = vcmask 1043456   ;;  %vm442_vm1 = vcmask 97280   ;;  %vm1536_vm2 = vmmov 1   ;;  %v428_v14 = vld [vmem:[%s1690_s13] sm:$0xff] }
  0x40   : > { %vm1707_vm3 = vmpackc.low %vm449_vm0, %vm1536_vm2  ;;  %v429_v15 = vld [vmem:[%s1690_s13 + $0x8] sm:$0xff]  ;;  %v430_v24 = vld [vmem:[%s1690_s13 + $0x10] sm:$0xff]  ;;  %vm768_vm4 = vcmask 785408   ;;  %p1840_p11 = scmp.ne.s32.totalorder %s1833_s10, 0 }
  0x41   : > { %s376_s16 = scalar_select %p375_p9, %s1523_s24, 3  ;;  %v1293_v20 = vpack.c.bf16 %v429_v15, %v428_v14  ;;  %v431_v25 = vld [vmem:[%s1690_s13 + $0x18] sm:$0xff]  ;;  %v432_v31 = vld [vmem:[%s1690_s13 + $0x20] sm:$0xff]  ;;  %v433_v32 = vld [vmem:[%s1690_s13 + $0x28] sm:$0xff] }
  0x42   : > { %v1297_v28 = vpack.c.bf16 %v431_v25, %v430_v24  ;;  %v1301_v34 = vpack.c.bf16 %v433_v32, %v432_v31  ;;  %v434_v37 = vld [vmem:[%s1690_s13 + $0x30] sm:$0xff]  ;;  %v435_v38 = vld [vmem:[%s1690_s13 + $0x38] sm:$0xff]  ;;  %v436_v43 = vld [vmem:[%s1690_s13 + $0x40] sm:$0xff] }
  0x43   : > { %s1350_s19 = smul.u32 96, %s376_s16  ;;  %s1139_s27 = sshll.u32 %s376_s16, 4  ;;  %v1305_v40 = vpack.c.bf16 %v435_v38, %v434_v37  ;;  %v437_v44 = vld [vmem:[%s1690_s13 + $0x48] sm:$0xff]  ;;  %v438_v49 = vld [vmem:[%s1690_s13 + $0x50] sm:$0xff]  ;;  %v439_v50 = vld [vmem:[%s1690_s13 + $0x58] sm:$0xff] }
  0x44   : > { %s1351_s28 = smul.u32 48, %s376_s16  ;;  %s384_s7 = scalar_lea.vmem %s1823_s1, %s1139_s27  ;;  %v1309_v46 = vpack.c.bf16 %v437_v44, %v436_v43  ;;  %v1313_v52 = vpack.c.bf16 %v439_v50, %v438_v49 }
  0x45   : > { %s397_s17 = scalar_lea.vmem %s1826_s4, %s1139_s27  ;;  %v414_v1 = vld [vmem:[%s384_s7] sm:$0xff]  ;;  %s1716_s3 = scalar_lea.vmem %s1824_s2, %s1350_s19  ;;  %v415_v16 = vld [vmem:[%s384_s7 + $0x8] sm:$0xff] }
  0x46   : > { %s405_s14 = scalar_lea.vmem %s1827_s5, %s1351_s28  ;;  %v440_v2 = vld [vmem:[%s397_s17] sm:$0xff]  ;;  %1191 = vmatprep.mubr.msk.f32.mxu0 %vm442_vm1, %v414_v1  ;;  %1205 = vmatprep.mubr.msk.f32.mxu1 %vm442_vm1, %v414_v1  ;;  %v441_v8 = vld [vmem:[%s397_s17 + $0x8] sm:$0xf]  ;;  %s379_s30 = scalar_lea.vmem %s1822_s0, %s1139_s27  ;;  %v418_v22 = vld [vmem:[%s1716_s3 + $0x10] sm:$0xff] }
  0x47   : > { %v406_v3 = vld [vmem:[%s405_s14] sm:$0xff]  ;;  %v407_v4 = vld [vmem:[%s405_s14 + $0x8] sm:$0xf]  ;;  %v408_v9 = vld [vmem:[%s405_s14 + $0x10] sm:$0xff]  ;;  %v1275_v11 = vpack.c.bf16 %v441_v8, %v440_v2  ;;  %s1109_s13 = sshll.u32 %s1686_s15, 4  ;;  %s1142_s7 = sshll.u32 %s1523_s24, 8 }
  0x48   : > { %v410_v5 = vld [vmem:[%s405_s14 + $0x20] sm:$0xff]  ;;  %v1269_v6 = vpack.c.bf16 %v407_v4, %v406_v3  ;;  %v411_v7 = vld [vmem:[%s405_s14 + $0x28] sm:$0xf]  ;;  %v409_v12 = vld [vmem:[%s405_s14 + $0x18] sm:$0xf]  ;;  %s374_s19 = scalar_lea.vmem [#allocation5], %s1109_s13  ;;  %s1774_s9 = scalar_lea.hbm %s1828_s6, %s1142_s7 }
  0x49   : > { %v1281_v10 = vpack.c.bf16 %v411_v7, %v410_v5  ;;  %v1287_v13 = vpack.c.bf16 %v409_v12, %v408_v9  ;;  %v416_v17 = vld [vmem:[%s1716_s3] sm:$0xff]  ;;  %v417_v18 = vld [vmem:[%s1716_s3 + $0x8] sm:$0xff]  ;;  %v419_v23 = vld [vmem:[%s1716_s3 + $0x18] sm:$0xff]  ;;  %s948_s27 = sshll.u32 %s374_s19, 4  ;;  %s934_s14 = scalar_lea.sflag [#allocation4], %s1686_s15  ;;  %s1769_s27 = int_to_ptr.vmem [resolvable:$true] %s948_s27 }
  0x4a   : > { %1271 = vmatprep.subr.msk.bf16.mxu0 %vm1707_vm3, %v1269_v6  ;;  %v412_v19 = vld [vmem:[%s379_s30] sm:$0xff]  ;;  %v1317_v21 = vpack.c.bf16 %v417_v18, %v416_v17  ;;  %v413_v26 = vld [vmem:[%s379_s30 + $0x8] sm:$0xff]  ;;  %v1321_v27 = vpack.c.bf16 %v419_v23, %v418_v22  ;;  %v422_v35 = vld [vmem:[%s1716_s3 + $0x30] sm:$0xff]  ;;  %s1449_s24 = scalar_lea.vmem %s1769_s27, 256  ;;  %s1537_s16 = smov [#allocation5]  }
  0x4b   : > { %1283 = vmatprep.subr.msk.bf16.mxu1 %vm1707_vm3, %v1281_v10  ;;  %1274 = vmatpush3.bf16.msk.msra.mxu0 %vm1707_vm3, %v1269_v6  ;;  %v420_v29 = vld [vmem:[%s1716_s3 + $0x20] sm:$0xff]  ;;  %v421_v30 = vld [vmem:[%s1716_s3 + $0x28] sm:$0xff]  ;;  %v423_v36 = vld [vmem:[%s1716_s3 + $0x38] sm:$0xff]  ;;  %p1450_p8 = scmp.ne.s32.totalorder %s1769_s27, %s1449_s24  ;;  %s1453_s18 = sshll.u32 %s1537_s16, 4  ;;  %s1454_s18 = int_to_ptr.vmem [resolvable:$false] %s1453_s18 }
  0x4c   : > { %1286 = vmatpush3.bf16.msk.msra.mxu1 %vm1707_vm3, %v1281_v10  ;;  %1277 = vmatprep.subr.msk.bf16.mxu0 %vm1707_vm3, %v1275_v11  ;;  %v1325_v33 = vpack.c.bf16 %v421_v30, %v420_v29  ;;  %v1329_v39 = vpack.c.bf16 %v423_v36, %v422_v35  ;;  %v424_v41 = vld [vmem:[%s1716_s3 + $0x40] sm:$0xff]  ;;  %v425_v42 = vld [vmem:[%s1716_s3 + $0x48] sm:$0xff]  ;;  %v426_v47 = vld [vmem:[%s1716_s3 + $0x50] sm:$0xff]  ;;  %p1456_p12 = scmp.lt.s32.totalorder %s1769_s27, %s1454_s18 }
  0x4d   : > { %1289 = vmatprep.subr.msk.bf16.mxu1 %vm1707_vm3, %v1287_v13  ;;  %v1333_v45 = vpack.c.bf16 %v425_v42, %v424_v41  ;;  %v427_v48 = vld [vmem:[%s1716_s3 + $0x58] sm:$0xff]  ;;  %p1451_p13 = pnand %p1450_p8, %p1840_p11  ;;  %s1455_s3 = scalar_lea.vmem %s1454_s18, 512 }
  0x4e   : > { %1192 = vmatmul.mubr.msk.f32.vlgmr.msra.gmra.mrb[0].mxu0 %vm442_vm1, %v415_v16  ;;  %v1337_v51 = vpack.c.bf16 %v427_v48, %v426_v47  ;;  %p1457_p1 = scmp.lt.s32.totalorder %s1455_s3, %s1449_s24 }
  0x4f   : > { %1206 = vmatmul.mubr.msk.f32.vlgmr.msra.gmra.mrb[0].mxu1 %vm442_vm1, %v415_v16  ;;  %1280 = vmatpush3.bf16.msk.msra.mxu0 %vm1707_vm3, %v1275_v11  ;;  %p1452_p10 = pneg %p1451_p13 }
  0x50   : > { %1292 = vmatpush3.bf16.msk.msra.mxu1 %vm1707_vm3, %v1287_v13  ;;  %1198 = vmatprep.mubr.msk.f32.mxu0 %vm442_vm1, %v412_v19  ;;  %p1458_p3 = por %p1457_p1, %p1456_p12 }
  0x51   : > { %1212 = vmatprep.mubr.msk.f32.mxu1 %vm442_vm1, %v412_v19  ;;  %1294 = vmatprep.subr.bf16.mxu1 %v1293_v20 }
  0x52   : > { %1318 = vmatprep.subr.bf16.mxu0 %v1317_v21  ;;  %p1459_p5 = pnand %p1458_p3, %p1452_p10 }
  0x56   : > { %1199 = vmatmul.mubr.msk.f32.vlgmr.msra.gmra.mrb[0].mxu0 %vm442_vm1, %v413_v26 }
  0x57   : > { %1213 = vmatmul.mubr.msk.f32.vlgmr.msra.gmra.mrb[0].mxu1 %vm442_vm1, %v413_v26  ;;  %1320 = vmatpush3.bf16.msra.mxu0 %v1317_v21 }
  0x58   : > { %1296 = vmatpush3.bf16.msra.mxu1 %v1293_v20  ;;  %1322 = vmatprep.subr.bf16.mxu0 %v1321_v27 }
  0x59   : > { %1298 = vmatprep.subr.bf16.mxu1 %v1297_v28 }
  0x5b   : > { %1324 = vmatpush3.bf16.msra.mxu0 %v1321_v27 }
  0x5c   : > { %1300 = vmatpush3.bf16.msra.mxu1 %v1297_v28  ;;  %1326 = vmatprep.subr.bf16.mxu0 %v1325_v33 }
  0x5d   : > { %1302 = vmatprep.subr.bf16.mxu1 %v1301_v34 }
  0x5f   : > { %1328 = vmatpush3.bf16.msra.mxu0 %v1325_v33 }
  0x60   : > { %1304 = vmatpush3.bf16.msra.mxu1 %v1301_v34  ;;  %1330 = vmatprep.subr.bf16.mxu0 %v1329_v39 }
  0x61   : > { %1306 = vmatprep.subr.bf16.mxu1 %v1305_v40 }
  0x63   : > { %1332 = vmatpush3.bf16.msra.mxu0 %v1329_v39 }
  0x64   : > { %1308 = vmatpush3.bf16.msra.mxu1 %v1305_v40  ;;  %1334 = vmatprep.subr.bf16.mxu0 %v1333_v45 }
  0x65   : > { %1310 = vmatprep.subr.bf16.mxu1 %v1309_v46 }
  0x67   : > { %1336 = vmatpush3.bf16.msra.mxu0 %v1333_v45 }
  0x68   : > { %1312 = vmatpush3.bf16.msra.mxu1 %v1309_v46  ;;  %1338 = vmatprep.subr.bf16.mxu0 %v1337_v51 }
  0x69   : > { %1314 = vmatprep.subr.bf16.mxu1 %v1313_v52 }
  0x6b   : > { %1340 = vmatpush3.bf16.msra.mxu0 %v1337_v51 }
  0x6c   : > { %1316 = vmatpush3.bf16.msra.mxu1 %v1313_v52 }
 0x129   : > { %v1200_v53 = vpop.f32.mrb[0].mxu0 }
 0x12a   : > { %v1214_v54 = vpop.f32.mrb[0].mxu1  ;;  %v603_v55 = vpop.f32.mrb[1].mxu0 }
 0x12b   : > { %v759_v56 = vpop.f32.mrb[1].mxu1  ;;  %1266 = vmatprep.mubr.msk.f32.mxu0 %vm768_vm4, %v603_v55 }
 0x12c   : > { %1239 = vmatprep.mubr.msk.f32.mxu1 %vm768_vm4, %v759_v56  ;;  %1267 = vmatmul.mubr.msk.f32.vlgmr.msra.gmra.mrb[2].mxu0 %vm768_vm4, %v1200_v53 }
 0x12d   : > { %1240 = vmatmul.mubr.msk.f32.vlgmr.msra.gmra.mrb[2].mxu1 %vm768_vm4, %v1214_v54 }
 0x1ff   : > { %v1268_v57 = vpop.f32.mrb[2].mxu0 }
 0x200   : > { %v1241_v58 = vpop.f32.mrb[2].mxu1  ;;  %v922_v59 = vpop.f32.mrb[3].mxu0 }
 0x201   : > { %v928_v60 = vadd.f32 %v1268_v57, %v1241_v58  ;;  %v841_v61 = vpop.f32.mrb[3].mxu1 }
 0x202   : > { %v923_v62 = vadd.f32 %v922_v59, %v841_v61 }
 0x203   : > { %932 = vst [vmem:[%s374_s19 + $0x8] sm:$0xff] %v928_v60 }
 0x204   : > { %931 = vst [vmem:[%s374_s19] sm:$0xff] %v923_v62 }
 0x205   : > { %1462 = shalt.err (!%p1459_p5)
}
 0x206   : > { %s1463_s28 = scalar_lea.hbm %s1774_s9, 256  ;;  %s1467_s13 = scalar_lea.hbm %s1828_s6, 1024 }
 0x207   : > { %p1464_p6 = scmp.ne.s32.totalorder %s1774_s9, %s1463_s28  ;;  %p1468_p2 = scmp.lt.u32.totalorder %s1774_s9, %s1828_s6 }
 0x208   : > { %p1469_p4 = scmp.lt.u32.totalorder %s1467_s13, %s1463_s28  ;;  %p1471_p8 = scmp.lt.u32.totalorder %s1463_s28, %s1774_s9 }
 0x209   : > { %p1465_p7 = pnand %p1464_p6, %p1840_p11 }
 0x20a   : > { %p1470_p9 = por %p1469_p4, %p1468_p2 }
 0x20b   : > { %p1466_p0 = pneg %p1465_p7 }
 0x20c   : > { %p1472_p13 = por %p1471_p8, %p1470_p9 }
 0x20e   : > { %p1473_p10 = pnand %p1472_p13, %p1466_p0 }
 0x210   : > { %1476 = shalt.err (!%p1473_p10)
}
 0x211   : > { %s1538_s8 = smov 128   ;;  %s1539_s17 = smov 8  }
 0x212   : > { %1354 = dma.vmem_to_hbm [thread:$0]  (%p1840_p11), %s1769_s27, 256, %s1774_s9, %s934_s14, %s1538_s8, %s1538_s8, %s1539_s17  }
 0x213 PF: > { %p1365_p12 = scmp.ge.s32.totalorder %s1531_s26, 2  ;;  %s963_s24 = sand.u32 1, %s1511_s21  }
 0x214   : > { %p1841_p1 = scmp.ne.s32.totalorder %s1834_s12, 0  ;;  %s964_s16 = scalar_lea.sflag [#allocation4], %s963_s24 }
 0x216   : > { %p1361_p3 = pnand %p1365_p12, %p1841_p1 }
 0x218   : > { %1506 = dma.done.wait (!%p1361_p3), %s964_s16, 256  }
 0x219   : > { %1508 = vsyncadd (!%p1361_p3), %s964_s16, 4294967040  ;;  %s22_s26 = sadd.s32 1, %s1531_s26   ;;  %s1842_s21 = smov %s1515_s22 }
 0x21a   : > { %p19_p5 = scmp.ge.s32.totalorder %s22_s26, 6   ;;  %s1843_s22 = smov %s1519_s23 }
 0x21b   : > { %s1844_s23 = smov %s1631_s11  ;;  %s1845_s24 = smov %s1527_s25 }
 0x21c   : > { %s1846_s25 = smov %s1848_s29  ;;  %21 = sbr.rel (!%p19_p5) target bundleno = 8 (0x8), region = 104 }
 0x223   :  { %969 = vsyncpa [#allocation3], 1 }
 0x224   :  { %971 = vsyncpa [#allocation3 + $0x1], 1 }
 0x225   :  { %972 = vsyncpa [#allocation4], 1 }
 0x226   :  { %974 = vsyncpa [#allocation4 + $0x1], 1 }

</bundles_post_ra>
